<compile_context>
chip_gen: v5e
topology: v5e:2x2
jax: 0.10.0
libtpu: 0.0.40
codegen_flags: <defaults>
</compile_context>

<pallas_src>
import jax
import jax.numpy as jnp
from jax.experimental import pallas as pl
from jax.experimental.pallas import tpu as pltpu


def fc_kernel(p_ref, w_ref, b_ref, o_ref):
    # One M-tile of the fused matmul + bias (the nn.Linear of the module).
    # bf16 operands -> f32 MXU accumulation; bias add and store in f32.
    acc = jnp.dot(p_ref[...], w_ref[...], preferred_element_type=jnp.float32)
    o_ref[...] = (acc + b_ref[...]).astype(o_ref.dtype)


def fc_pallas(patches, weight_kn, bias_row):
    """patches: (M, K), weight_kn: (K, N), bias_row: (1, N) f32 -> (M, N) f32.

    N must be a multiple of 128 (caller pads) so output stores are lane-dense.
    """
    M, K = patches.shape
    Kw, N = weight_kn.shape
    assert K == Kw and N % 128 == 0

    # M tile: as big as possible (per-grid-step overhead ~0.35us, VMEM cost here is
    # tiny), but keep >=2 grid steps when M allows so the parallel axis spans both
    # TensorCores on v7x.
    m128 = pl.cdiv(M, 128) * 128
    tm = min(1024, m128)
    if m128 // tm < 2 and m128 >= 256:
        tm = max(128, (m128 // 2) // 128 * 128)
    M_pad = pl.cdiv(M, tm) * tm
    if M_pad != M:
        patches = jnp.pad(patches, ((0, M_pad - M), (0, 0)))

    cost = pl.CostEstimate(
        flops=2 * M_pad * K * N,
        transcendentals=0,
        bytes_accessed=(M_pad * K * patches.dtype.itemsize
                        + K * N * weight_kn.dtype.itemsize
                        + M_pad * N * 4),
    )

    # TODO(synk): if this layer is ever scaled up (large K*N), tile K with an f32 VMEM
    # accumulator + "arbitrary" K axis instead of keeping the full weight resident
    # (v7x has only 64 MiB physical VMEM vs 128 MiB on v5e/v6e).
    out = pl.pallas_call(
        fc_kernel,
        out_shape=jax.ShapeDtypeStruct((M_pad, N), jnp.float32),
        grid_spec=pltpu.PrefetchScalarGridSpec(
            num_scalar_prefetch=0,
            grid=(M_pad // tm,),
            in_specs=[
                pl.BlockSpec((tm, K), lambda i: (i, 0)),   # streamed patch tile
                pl.BlockSpec((K, N), lambda i: (0, 0)),    # weight, resident
                pl.BlockSpec((1, N), lambda i: (0, 0)),    # bias, resident
            ],
            out_specs=pl.BlockSpec((tm, N), lambda i: (i, 0)),
        ),
        compiler_params=pltpu.CompilerParams(
            dimension_semantics=("parallel",)),
        cost_estimate=cost,
    )(patches, weight_kn, bias_row)
    return out[:M]


def multi_output_conv2d(x, weight, bias, *, kernel_size, m, out_channels,
                        stride=1, padding='same', use_pallas=True,
                        compute_dtype=jnp.bfloat16):
    """x: (B, C_in, H, W). weight: (C_out*m*m, C_in*k*k) (PyTorch Linear layout).
    bias: (C_out*m*m,). Returns (B, C_out, oh*m, ow*m)."""
    B, C, H, W = x.shape
    k = kernel_size
    if padding == 'same':
        total = k - 1
        p_left = total // 2
        p_right = total - p_left
        pads = (p_left, p_right, p_left, p_right)
    elif isinstance(padding, int):
        pads = (padding, padding, padding, padding)
    elif isinstance(padding, tuple):
        pads = padding
    else:
        raise ValueError("Padding must be 'same', an integer, or a tuple")
    # F.pad 4-tuple order = (W_left, W_right, H_top, H_bottom)
    wl, wr, ht, hb = pads
    xp = jnp.pad(x, ((0, 0), (0, 0), (ht, hb), (wl, wr)))

    _, _, Hp, Wp = xp.shape
    oh = (Hp - k) // stride + 1
    ow = (Wp - k) // stride + 1
    L = oh * ow
    K = C * k * k
    N = out_channels * m * m

    cdt = compute_dtype if use_pallas else jnp.float32
    # Build patches directly in (B*L, K) layout, K ordered channel-major then (kh, kw)
    # exactly like F.unfold. The NHWC view makes each shifted window slice contiguous
    # on the channel (last) axis, and the stack+reshape lands in the matmul-ready
    # layout -- no transpose pass over the blown-up patch matrix.
    xn = jnp.transpose(xp, (0, 2, 3, 1)).astype(cdt)            # (B, Hp, Wp, C)
    cols = []
    for kh in range(k):
        for kw in range(k):
            cols.append(xn[:, kh:kh + stride * (oh - 1) + 1:stride,
                            kw:kw + stride * (ow - 1) + 1:stride, :])
    patches = jnp.stack(cols, axis=-1)                          # (B, oh, ow, C, k*k)
    patches = patches.reshape(B * L, K)                         # row = b*L + i*ow + j

    if use_pallas:
        # Pad N up to a multiple of 128 -> lane-dense (unmasked) output stores.
        N_pad = pl.cdiv(N, 128) * 128
        w_kn = jnp.pad(weight.T.astype(cdt), ((0, 0), (0, N_pad - N)))   # (K, N_pad)
        b_row = jnp.pad(bias, (0, N_pad - N)).reshape(1, N_pad).astype(jnp.float32)
        out = fc_pallas(patches, w_kn, b_row)[:, :N]            # (B*L, N) f32
    else:
        out = patches @ weight.T + bias[None, :]                # pure-f32 reference

    # Pixel-shuffle style reassembly (output-sized, kept as JAX glue).
    out = out.reshape(B, oh, ow, out_channels, m, m)
    out = out.transpose(0, 3, 1, 4, 2, 5)
    out = out.reshape(B, out_channels, oh * m, ow * m)
    return out


if __name__ == "__main__":
    # Module config: in_channels=4, out_channels=8, kernel_size=3, m=2, stride=1, padding='same'
    B, C_in, H, W = 2, 4, 16, 16
    C_out, k, m = 8, 3, 2

    key = jax.random.PRNGKey(0)
    kx, kw_, kb = jax.random.split(key, 3)
    x = jax.random.normal(kx, (B, C_in, H, W), dtype=jnp.float32)
    # nn.Linear(in_channels*k*k, out_channels*m*m): weight (out_f, in_f), bias (out_f,)
    in_f = C_in * k * k
    out_f = C_out * m * m
    bound = 1.0 / (in_f ** 0.5)
    weight = jax.random.uniform(kw_, (out_f, in_f), jnp.float32, -bound, bound)
    bias = jax.random.uniform(kb, (out_f,), jnp.float32, -bound, bound)

    out = multi_output_conv2d(x, weight, bias, kernel_size=k, m=m,
                              out_channels=C_out, stride=1, padding='same',
                              use_pallas=True)
    out = jax.block_until_ready(out)

    # Pure-f32 JAX reference for correctness check.
    ref = multi_output_conv2d(x, weight, bias, kernel_size=k, m=m,
                              out_channels=C_out, stride=1, padding='same',
                              use_pallas=False)
    assert out.shape == (B, C_out, H * m, W * m), out.shape
    # bf16 MXU inputs vs f32 reference -> loosened tolerance (deliberate precision tradeoff).
    max_err = float(jnp.max(jnp.abs(out - ref)))
    assert jnp.allclose(out, ref, atol=5e-2, rtol=5e-2), max_err
    print("KERNEL_OK")
</pallas_src>

<mosaic_0001>
module attributes {stable_mosaic.version = 11 : i64} {
  func.func @fc_kernel(%arg0: i32, %arg1: memref<256x36xbf16, #tpu.memory_space<vmem>>, %arg2: memref<36x128xbf16, #tpu.memory_space<vmem>>, %arg3: memref<1x128xf32, #tpu.memory_space<vmem>>, %arg4: memref<256x128xf32, #tpu.memory_space<vmem>>) attributes {dimension_semantics = [#tpu.dimension_semantics<parallel>], iteration_bounds = array<i64: 2>, scalar_prefetch = 0 : i64, scratch_operands = 0 : i64, tpu.core_type = #tpu.core_type<tc>, window_params = [{transform_indices = @transform_0, window_bounds = array<i64: 256, 36>}, {pipeline_mode = #tpu.pipeline_mode<synchronous>, transform_indices = @transform_1, window_bounds = array<i64: 36, 128>}, {pipeline_mode = #tpu.pipeline_mode<synchronous>, transform_indices = @transform_2, window_bounds = array<i64: 1, 128>}, {transform_indices = @transform_3, window_bounds = array<i64: 256, 128>}]} {
    %c0 = arith.constant 0 : index
    %c0_0 = arith.constant 0 : index
    %0 = vector.load %arg1[%c0, %c0_0] : memref<256x36xbf16, #tpu.memory_space<vmem>>, vector<256x36xbf16>
    %c0_1 = arith.constant 0 : index
    %c0_2 = arith.constant 0 : index
    %1 = vector.load %arg2[%c0_1, %c0_2] : memref<36x128xbf16, #tpu.memory_space<vmem>>, vector<36x128xbf16>
    %cst = arith.constant dense<0.000000e+00> : vector<256x128xf32>
    %2 = tpu.matmul %0, %1, %cst {dimension_numbers = #tpu.dot_dimension_numbers<[1], [0], [0], [1], [0, 0, 1, 1], [], []>} : vector<256x36xbf16>, vector<36x128xbf16>, vector<256x128xf32> -> vector<256x128xf32>
    %c0_3 = arith.constant 0 : index
    %c0_4 = arith.constant 0 : index
    %3 = vector.load %arg3[%c0_3, %c0_4] : memref<1x128xf32, #tpu.memory_space<vmem>>, vector<1x128xf32>
    %4 = vector.broadcast %3 : vector<1x128xf32> to vector<256x128xf32>
    %5 = arith.addf %2, %4 : vector<256x128xf32>
    %c0_5 = arith.constant 0 : index
    %c0_6 = arith.constant 0 : index
    %6 = vector.load %arg4[%c0_5, %c0_6] : memref<256x128xf32, #tpu.memory_space<vmem>>, vector<256x128xf32>
    tpu.vector_store %arg4[%c0_5, %c0_6], %5 {strides = array<i32>} : memref<256x128xf32, #tpu.memory_space<vmem>>, vector<256x128xf32>,
    return
  }
  func.func @transform_0(%arg0: i32) -> (i32, i32) {
    %c0_i32 = arith.constant 0 : i32
    %c0_i32_0 = arith.constant 0 : i32
    return %arg0, %c0_i32 : i32, i32
  }
  func.func @transform_1(%arg0: i32) -> (i32, i32) {
    %c0_i32 = arith.constant 0 : i32
    %c0_i32_0 = arith.constant 0 : i32
    %c0_i32_1 = arith.constant 0 : i32
    return %c0_i32, %c0_i32_0 : i32, i32
  }
  func.func @transform_2(%arg0: i32) -> (i32, i32) {
    %c0_i32 = arith.constant 0 : i32
    %c0_i32_0 = arith.constant 0 : i32
    %c0_i32_1 = arith.constant 0 : i32
    return %c0_i32, %c0_i32_0 : i32, i32
  }
  func.func @transform_3(%arg0: i32) -> (i32, i32) {
    %c0_i32 = arith.constant 0 : i32
    %c0_i32_0 = arith.constant 0 : i32
    return %arg0, %c0_i32 : i32, i32
  }
}

</mosaic_0001>

<bundles_post_ra>
// kernel: tpu_custom_call.1
= control target key start
LH: loop header
LB: loop body
LE: loop exit
PB: predicated region body
PF: predicated region fallthrough
CT: control target
= control target key end

     0   :  { %8 = vsyncpa [#allocation3], 0  ;;  %s1020_s0 = inlined_call_operand.vmem [shape: bf16[512,36], index: 0, kind: input, shape index: {}]   ;;  %s1021_s1 = inlined_call_operand.vmem [shape: bf16[36,128], index: 1, kind: input, shape index: {}]   ;;  %s1022_s2 = inlined_call_operand.vmem [shape: f32[1,128], index: 2, kind: input, shape index: {}]   ;;  %s1023_s3 = inlined_call_operand.hbm [shape: f32[512,128], index: 3, kind: output, shape index: {}]  }
   0x1   :  { %10 = vsyncpa [#allocation3 + $0x1], 0  ;;  %s817_s12 = smov 0   ;;  %s819_s13 = smov 0  }
   0x2   :  { %s821_s14 = smov 0   ;;  %s823_s15 = smov 0  }
   0x3 LB: > { %s838_s16 = sadd.s32 4294967295, %s793_s15   ;;  %s561_s17 = sadd.s32 4294967294, %s793_s15   ;;  %s793_s15 = sphi %s823_s15, %s1029_s15   ;;  %s789_s14 = sphi %s821_s14, %s1028_s14   ;;  %s785_s13 = sphi %s819_s13, %s1027_s13   ;;  %s781_s12 = sphi %s817_s12, %s1026_s12  }
   0x4   : > { %s842_s18 = sadd.s32 1, %s793_s15   ;;  %s91_s19 = sadd.s32 1, %s789_s14 }
   0x5   : > { %s88_s20 = ssub.s32 %s793_s15, %s842_s18  ;;  %p101_p0 = scmp.ne.s32.totalorder %s789_s14, %s785_s13 }
   0x6   : > { %p89_p1 = scmp.eq.s32.totalorder %s88_s20, 0  ;;  %p102_p2 = scmp.eq.s32.totalorder %s838_s16, 1 }
   0x7   : > { %p107_p3 = scmp.ne.s32.totalorder %s785_s13, %s781_s12  ;;  %p108_p4 = scmp.eq.s32.totalorder %s561_s17, 1 }
   0x8   : > { %s853_s21 = scalar_select %p89_p1, %s789_s14, %s91_s19  }
   0x9   : > { %p855_p5 = por %p102_p2, %p101_p0  ;;  %p859_p6 = por %p108_p4, %p107_p3 }
   0xa   : > { %p564_p7 = scmp.ge.s32.totalorder %s793_s15, 1  ;;  %p141_p8 = scmp.lt.s32.totalorder %s793_s15, 3 }
   0xc   : > { %p142_p9 = pnand %p564_p7, %p141_p8 }
   0xd   : > { %s566_s26 = sshll.u32 (!%p142_p9), %s838_s16, 5  ;;  %s162_s8 = sand.u32 (!%p142_p9), 1, %s785_s13  }
   0xe   : > { %145 = sbr.rel (%p142_p9) target bundleno = 232 (0xe8), region = 32  ;;  %p166_p10 = scmp.lt.s32.totalorder (!%p142_p9), %s566_s26, 63 }
   0xf   : > { %s565_s9 = sshll.u32 (!%p142_p9), %s162_s8, 8  ;;  %s679_s19 = sshll.u32 (!%p142_p9), %s838_s16, 8 }
  0x10   : > { %s922_s17 = scalar_lea.vmem (!%p142_p9), [#allocation2], %s565_s9  ;;  %s495_s25 = scalar_lea.hbm (!%p142_p9), %s1023_s3, %s679_s19 }
  0x11   : > { %s496_s16 = sshll.u32 (!%p142_p9), %s922_s17, 4  ;;  %s484_s27 = scalar_lea.sflag (!%p142_p9), [#allocation3], %s162_s8  ;;  %s497_s16 = int_to_ptr.vmem [resolvable:$true] %s496_s16 }
  0x12   : > { %s751_s5 = scalar_lea.hbm (!%p142_p9), %s1023_s3, 512 }
  0x13   : > { %v209_v0 = vld [vmem:[%s1021_s1 + $0x10] sm:$0x3]  ;;  %vm358_vm0 = vcmask 1041408   ;;  %s1031_s26 = smov (!%p166_p10, %s566_s26), 63  ;;  %v678_v4 = vld [vmem:[%s1021_s1 + $0x8] sm:$0xff]  ;;  %v677_v5 = vld [vmem:[%s1021_s1] sm:$0xff] }
  0x14   : > { %v303_v1 = vunpack.c.l.b16 %v209_v0  ;;  %s567_s29 = sshll.u32 %s1031_s26, 2  ;;  %vm309_vm1 = vcmask 293888   ;;  %v918_v22 = vld [vmem:[%s1022_s2] ss:$0 sm:$0xff]  ;;  %s498_s26 = sshll.u32 %s495_s25, 4  ;;  %s499_s26 = int_to_ptr.hbm [resolvable:$true] %s498_s26 }
  0x15   : > { %s878_s7 = scalar_lea.vmem %s1020_s0, %s567_s29  ;;  %s745_s28 = sshra.s32 %s499_s26, 4  ;;  %s746_s28 = int_to_ptr.hbm [resolvable:$true] %s745_s28 }
  0x16   : > { %v306_v2 = vpack.c.b16 %v303_v1, %v303_v1  ;;  %v661_v6 = vld [vmem:[%s878_s7] sm:$0xff]  ;;  %v662_v10 = vld [vmem:[%s878_s7 + $0x8] sm:$0xff]  ;;  %v663_v14 = vld [vmem:[%s878_s7 + $0x10] sm:$0xff]  ;;  %s747_s29 = scalar_lea.hbm %s746_s28, 256  ;;  %p752_p0 = scmp.lt.s32.totalorder %s746_s28, %s1023_s3 }
  0x17   : > { %v665_v7 = vld [vmem:[%s878_s7 + $0x20] sm:$0xff]  ;;  %v666_v11 = vld [vmem:[%s878_s7 + $0x28] sm:$0xff]  ;;  %v667_v15 = vld [vmem:[%s878_s7 + $0x30] sm:$0xff]  ;;  %p748_p11 = scmp.ne.s32.totalorder %s746_s28, %s747_s29  ;;  %p753_p1 = scmp.lt.s32.totalorder %s751_s5, %s747_s29 }
  0x18   : > { %v360_v3 = vsel %vm358_vm0, %v306_v2, 0  ;;  %v669_v8 = vld [vmem:[%s878_s7 + $0x40] sm:$0xff]  ;;  %v670_v12 = vld [vmem:[%s878_s7 + $0x48] sm:$0xff]  ;;  %v671_v16 = vld [vmem:[%s878_s7 + $0x50] sm:$0xff] }
  0x19   : > { %367 = vmatpush.bf16.msra.mxu0 %v360_v3  ;;  %680 = vmatpush.bf16.msra.mxu1 %v360_v3  ;;  %v673_v9 = vld [vmem:[%s878_s7 + $0x60] sm:$0xff]  ;;  %v674_v13 = vld [vmem:[%s878_s7 + $0x68] sm:$0xff]  ;;  %v675_v17 = vld [vmem:[%s878_s7 + $0x70] sm:$0xff]  ;;  %p749_p12 = pnand %p748_p11, %p855_p5  ;;  %p754_p2 = por %p753_p1, %p752_p0 }
  0x1a   : > { %681 = vmatpush.bf16.msra.mxu2 %v360_v3  ;;  %682 = vmatpush.bf16.msra.mxu3 %v360_v3  ;;  %v664_v18 = vld [vmem:[%s878_s7 + $0x18] sm:$0xff] }
  0x1b   : > { %v668_v19 = vld [vmem:[%s878_s7 + $0x38] sm:$0xff]  ;;  %p750_p13 = pneg %p749_p12 }
  0x1c   : > { %v672_v20 = vld [vmem:[%s878_s7 + $0x58] sm:$0xff] }
  0x1d   : > { %368 = vmatpush.bf16.msra.mxu0 %v678_v4  ;;  %683 = vmatpush.bf16.msra.mxu1 %v678_v4  ;;  %v676_v21 = vld [vmem:[%s878_s7 + $0x78] sm:$0xff]  ;;  %p755_p3 = pnand %p754_p2, %p750_p13 }
  0x1e   : > { %684 = vmatpush.bf16.msra.mxu2 %v678_v4  ;;  %685 = vmatpush.bf16.msra.mxu3 %v678_v4 }
  0x21   : > { %369 = vmatpush.bf16.msra.mxu0 %v677_v5  ;;  %686 = vmatpush.bf16.msra.mxu1 %v677_v5 }
  0x22   : > { %687 = vmatpush.bf16.msra.mxu2 %v677_v5  ;;  %688 = vmatpush.bf16.msra.mxu3 %v677_v5 }
  0x24   : > { %640 = vmatmul.msk.bf16.vlgmr.msra.gmra.mxu0 %vm309_vm1, %v661_v6  ;;  %644 = vmatmul.msk.bf16.vlgmr.msra.gmra.mxu1 %vm309_vm1, %v665_v7 }
  0x25   : > { %648 = vmatmul.msk.bf16.vlgmr.msra.gmra.mxu2 %vm309_vm1, %v669_v8  ;;  %652 = vmatmul.msk.bf16.vlgmr.msra.gmra.mxu3 %vm309_vm1, %v673_v9 }
  0x34   : > { %641 = vmatmul.msk.bf16.gmra.mxu0 %vm309_vm1, %v662_v10  ;;  %645 = vmatmul.msk.bf16.gmra.mxu1 %vm309_vm1, %v666_v11 }
  0x35   : > { %649 = vmatmul.msk.bf16.gmra.mxu2 %vm309_vm1, %v670_v12  ;;  %653 = vmatmul.msk.bf16.gmra.mxu3 %vm309_vm1, %v674_v13 }
  0x44   : > { %642 = vmatmul.msk.bf16.gmra.mxu0 %vm309_vm1, %v663_v14  ;;  %646 = vmatmul.msk.bf16.gmra.mxu1 %vm309_vm1, %v667_v15 }
  0x45   : > { %650 = vmatmul.msk.bf16.gmra.mxu2 %vm309_vm1, %v671_v16  ;;  %654 = vmatmul.msk.bf16.gmra.mxu3 %vm309_vm1, %v675_v17 }
  0x54   : > { %643 = vmatmul.msk.bf16.gmra.mxu0 %vm309_vm1, %v664_v18  ;;  %647 = vmatmul.msk.bf16.gmra.mxu1 %vm309_vm1, %v668_v19 }
  0x55   : > { %651 = vmatmul.msk.bf16.gmra.mxu2 %vm309_vm1, %v672_v20  ;;  %655 = vmatmul.msk.bf16.gmra.mxu3 %vm309_vm1, %v676_v21 }
  0xa1   : > { %v371_v23 = vpop.f32.mrf.mxu0  ;;  %v391_v24 = vpop.f32.mrf.mxu1 }
  0xa2   : > { %v372_v25 = vadd.f32 %v918_v22, %v371_v23  ;;  %v392_v26 = vadd.f32 %v918_v22, %v391_v24 }
  0xa4   : > { %451 = vst [vmem:[%s922_s17] sm:$0xff] %v372_v25 }
  0xa5   : > { %459 = vst [vmem:[%s922_s17 + $0x40] sm:$0xff] %v392_v26 }
  0xa8   : > { %v411_v27 = vpop.f32.mrf.mxu2  ;;  %v431_v28 = vpop.f32.mrf.mxu3 }
  0xa9   : > { %v412_v29 = vadd.f32 %v918_v22, %v411_v27  ;;  %v432_v30 = vadd.f32 %v918_v22, %v431_v28  ;;  %v373_v31 = vpop.f32.mrf.mxu0  ;;  %v393_v32 = vpop.f32.mrf.mxu1 }
  0xaa   : > { %v374_v33 = vadd.f32 %v918_v22, %v373_v31  ;;  %v394_v34 = vadd.f32 %v918_v22, %v393_v32 }
  0xab   : > { %467 = vst [vmem:[%s922_s17 + $0x80] sm:$0xff] %v412_v29 }
  0xac   : > { %475 = vst [vmem:[%s922_s17 + $0xc0] sm:$0xff] %v432_v30 }
  0xad   : > { %452 = vst [vmem:[%s922_s17 + $0x8] sm:$0xff] %v374_v33 }
  0xae   : > { %460 = vst [vmem:[%s922_s17 + $0x48] sm:$0xff] %v394_v34 }
  0xb0   : > { %v413_v35 = vpop.f32.mrf.mxu2  ;;  %v433_v36 = vpop.f32.mrf.mxu3 }
  0xb1   : > { %v414_v37 = vadd.f32 %v918_v22, %v413_v35  ;;  %v434_v38 = vadd.f32 %v918_v22, %v433_v36  ;;  %v376_v39 = vpop.f32.mrf.mxu0  ;;  %v396_v40 = vpop.f32.mrf.mxu1 }
  0xb2   : > { %v377_v41 = vadd.f32 %v918_v22, %v376_v39  ;;  %v397_v42 = vadd.f32 %v918_v22, %v396_v40 }
  0xb3   : > { %468 = vst [vmem:[%s922_s17 + $0x88] sm:$0xff] %v414_v37 }
  0xb4   : > { %476 = vst [vmem:[%s922_s17 + $0xc8] sm:$0xff] %v434_v38 }
  0xb5   : > { %453 = vst [vmem:[%s922_s17 + $0x10] sm:$0xff] %v377_v41 }
  0xb6   : > { %461 = vst [vmem:[%s922_s17 + $0x50] sm:$0xff] %v397_v42 }
  0xb8   : > { %v416_v43 = vpop.f32.mrf.mxu2  ;;  %v436_v44 = vpop.f32.mrf.mxu3 }
  0xb9   : > { %v417_v45 = vadd.f32 %v918_v22, %v416_v43  ;;  %v437_v46 = vadd.f32 %v918_v22, %v436_v44  ;;  %v378_v47 = vpop.f32.mrf.mxu0  ;;  %v398_v48 = vpop.f32.mrf.mxu1 }
  0xba   : > { %v379_v49 = vadd.f32 %v918_v22, %v378_v47  ;;  %v399_v50 = vadd.f32 %v918_v22, %v398_v48 }
  0xbb   : > { %469 = vst [vmem:[%s922_s17 + $0x90] sm:$0xff] %v417_v45 }
  0xbc   : > { %477 = vst [vmem:[%s922_s17 + $0xd0] sm:$0xff] %v437_v46 }
  0xbd   : > { %454 = vst [vmem:[%s922_s17 + $0x18] sm:$0xff] %v379_v49 }
  0xbe   : > { %462 = vst [vmem:[%s922_s17 + $0x58] sm:$0xff] %v399_v50 }
  0xc0   : > { %v418_v51 = vpop.f32.mrf.mxu2  ;;  %v438_v52 = vpop.f32.mrf.mxu3 }
  0xc1   : > { %v419_v53 = vadd.f32 %v918_v22, %v418_v51  ;;  %v439_v54 = vadd.f32 %v918_v22, %v438_v52  ;;  %v381_v55 = vpop.f32.mrf.mxu0  ;;  %v401_v56 = vpop.f32.mrf.mxu1 }
  0xc2   : > { %v382_v57 = vadd.f32 %v918_v22, %v381_v55  ;;  %v402_v58 = vadd.f32 %v918_v22, %v401_v56 }
  0xc3   : > { %470 = vst [vmem:[%s922_s17 + $0x98] sm:$0xff] %v419_v53 }
  0xc4   : > { %478 = vst [vmem:[%s922_s17 + $0xd8] sm:$0xff] %v439_v54 }
  0xc5   : > { %455 = vst [vmem:[%s922_s17 + $0x20] sm:$0xff] %v382_v57 }
  0xc6   : > { %463 = vst [vmem:[%s922_s17 + $0x60] sm:$0xff] %v402_v58 }
  0xc8   : > { %v421_v59 = vpop.f32.mrf.mxu2  ;;  %v441_v60 = vpop.f32.mrf.mxu3 }
  0xc9   : > { %v422_v61 = vadd.f32 %v918_v22, %v421_v59  ;;  %v442_v62 = vadd.f32 %v918_v22, %v441_v60  ;;  %v383_v63 = vpop.f32.mrf.mxu0  ;;  %v403_v0 = vpop.f32.mrf.mxu1 }
  0xca   : > { %v384_v1 = vadd.f32 %v918_v22, %v383_v63  ;;  %v404_v2 = vadd.f32 %v918_v22, %v403_v0 }
  0xcb   : > { %471 = vst [vmem:[%s922_s17 + $0xa0] sm:$0xff] %v422_v61 }
  0xcc   : > { %479 = vst [vmem:[%s922_s17 + $0xe0] sm:$0xff] %v442_v62 }
  0xcd   : > { %456 = vst [vmem:[%s922_s17 + $0x28] sm:$0xff] %v384_v1 }
  0xce   : > { %464 = vst [vmem:[%s922_s17 + $0x68] sm:$0xff] %v404_v2 }
  0xd0   : > { %v423_v3 = vpop.f32.mrf.mxu2  ;;  %v443_v4 = vpop.f32.mrf.mxu3 }
  0xd1   : > { %v424_v5 = vadd.f32 %v918_v22, %v423_v3  ;;  %v444_v6 = vadd.f32 %v918_v22, %v443_v4  ;;  %v386_v7 = vpop.f32.mrf.mxu0  ;;  %v406_v8 = vpop.f32.mrf.mxu1 }
  0xd2   : > { %v387_v9 = vadd.f32 %v918_v22, %v386_v7  ;;  %v407_v10 = vadd.f32 %v918_v22, %v406_v8 }
  0xd3   : > { %472 = vst [vmem:[%s922_s17 + $0xa8] sm:$0xff] %v424_v5 }
  0xd4   : > { %480 = vst [vmem:[%s922_s17 + $0xe8] sm:$0xff] %v444_v6 }
  0xd5   : > { %457 = vst [vmem:[%s922_s17 + $0x30] sm:$0xff] %v387_v9 }
  0xd6   : > { %465 = vst [vmem:[%s922_s17 + $0x70] sm:$0xff] %v407_v10 }
  0xd8   : > { %v426_v11 = vpop.f32.mrf.mxu2  ;;  %v446_v12 = vpop.f32.mrf.mxu3 }
  0xd9   : > { %v427_v13 = vadd.f32 %v918_v22, %v426_v11  ;;  %v447_v14 = vadd.f32 %v918_v22, %v446_v12  ;;  %v388_v15 = vpop.f32.mrf.mxu0  ;;  %v408_v16 = vpop.f32.mrf.mxu1 }
  0xda   : > { %v389_v17 = vadd.f32 %v918_v22, %v388_v15  ;;  %v409_v18 = vadd.f32 %v918_v22, %v408_v16 }
  0xdb   : > { %473 = vst [vmem:[%s922_s17 + $0xb0] sm:$0xff] %v427_v13 }
  0xdc   : > { %481 = vst [vmem:[%s922_s17 + $0xf0] sm:$0xff] %v447_v14 }
  0xdd   : > { %458 = vst [vmem:[%s922_s17 + $0x38] sm:$0xff] %v389_v17 }
  0xde   : > { %466 = vst [vmem:[%s922_s17 + $0x78] sm:$0xff] %v409_v18 }
  0xe0   : > { %v428_v19 = vpop.f32.mrf.mxu2  ;;  %v448_v20 = vpop.f32.mrf.mxu3 }
  0xe1   : > { %v429_v21 = vadd.f32 %v918_v22, %v428_v19  ;;  %v449_v23 = vadd.f32 %v918_v22, %v448_v20 }
  0xe3   : > { %474 = vst [vmem:[%s922_s17 + $0xb8] sm:$0xff] %v429_v21 }
  0xe4   : > { %482 = vst [vmem:[%s922_s17 + $0xf8] sm:$0xff] %v449_v23 }
  0xe5   : > { %758 = shalt.err (!%p755_p3)
}
  0xe6   : > { %s795_s8 = smov 128   ;;  %s796_s9 = smov 8  }
  0xe7   : > { %689 = dma.vmem_to_hbm [thread:$0]  (%p855_p5), %s497_s16, 4096, %s499_s26, %s484_s27, %s795_s8, %s795_s8, %s796_s9  }
  0xe8 PF: > { %p695_p4 = scmp.ge.s32.totalorder %s793_s15, 2  ;;  %s513_s10 = sand.u32 1, %s781_s12  }
  0xe9   : > { %s514_s11 = scalar_lea.sflag [#allocation3], %s513_s10 }
  0xea   : > { %p692_p7 = pnand %p695_p4, %p859_p6 }
  0xec   : > { %p693_p8 = pneg %p692_p7 }
  0xee   : > { %776 = dma.done.wait (%p693_p8), %s514_s11, 4096  }
  0xef   : > { %778 = vsyncadd (%p693_p8), %s514_s11, 4294963200  ;;  %p13_p9 = scmp.ge.s32.totalorder %s842_s18, 4   ;;  %s1026_s12 = smov %s785_s13 }
  0xf0   : > { %s1027_s13 = smov %s789_s14  ;;  %s1028_s14 = smov %s853_s21 }
  0xf1   : > { %s1029_s15 = smov %s842_s18  ;;  %15 = sbr.rel (!%p13_p9) target bundleno = 3 (0x3), region = 67 }
  0xf6   :  { %520 = vsyncpa [#allocation3], 1 }
  0xf7   :  { %522 = vsyncpa [#allocation3 + $0x1], 1 }

</bundles_post_ra>
